<compile_context>
chip_gen: v5e
topology: v5e:2x2
jax: 0.10.0
libtpu: 0.0.40
codegen_flags: <defaults>
</compile_context>

<pallas_src>
from functools import partial

import numpy as np
import jax
import jax.numpy as jnp
from jax.experimental import pallas as pl
from jax.experimental.pallas import tpu as pltpu


def _hetero_loss_kernel(inv_ref, f1_ref, f2_ref, out_ref, dist_acc, *, margin):
    """One (group, D-tile) step.

    inv_ref : SMEM (G,) f32     -- 1 / actual group size
    f1_ref  : VMEM (C, TD) f32  -- group block of feat1 (C = padded chunk rows)
    f2_ref  : VMEM (C, TD) f32  -- group block of feat2
    out_ref : SMEM (1, 1) f32   -- resident scalar accumulator (final loss)
    dist_acc: SMEM (1,)   f32   -- per-group squared-distance partial
    """
    g = pl.program_id(0)
    dj = pl.program_id(1)

    @pl.when((g == 0) & (dj == 0))
    def _():
        out_ref[0, 0] = jnp.float32(0.0)

    @pl.when(dj == 0)
    def _():
        dist_acc[0] = jnp.float32(0.0)

    # mean(f1) - mean(f2) == mean(f1 - f2): one subtraction, one sublane reduce.
    diff = f1_ref[...] - f2_ref[...]                                 # (C, TD)
    col = jnp.sum(diff, axis=0, keepdims=True) * inv_ref[g]          # (1, TD)
    dist_acc[0] = dist_acc[0] + jnp.sum(col * col)

    @pl.when(dj == pl.num_programs(1) - 1)
    def _():
        out_ref[0, 0] = out_ref[0, 0] + jnp.maximum(
            dist_acc[0] - jnp.float32(margin), jnp.float32(0.0))


def _pick_d_tile(d, c_pad, budget_bytes=8 << 20):
    """Largest lane-aligned D tile s.t. 2 inputs x 2 buffers stay under budget."""
    full_bytes = c_pad * d * 4 * 4  # 2 inputs x 2 pipeline buffers, f32
    if d % 128 != 0 or full_bytes <= budget_bytes:
        return d
    for td in (2048, 1024, 512, 256, 128):
        if d % td == 0 and c_pad * td * 16 <= budget_bytes:
            return td
    return d


def hetero_loss_pallas(feat1, feat2, label1, label2, *, margin=0.1):
    """Pallas equivalent of hetero_loss(dist_type='l2').forward.

    Note: like the PyTorch module, this assumes samples are grouped
    contiguously by label (torch.chunk is purely positional); label2 is unused.
    """
    feat1 = jnp.asarray(feat1, jnp.float32)
    feat2 = jnp.asarray(feat2, jnp.float32)
    n, d = feat1.shape

    label_num = int(np.unique(np.asarray(label1)).shape[0])

    # torch.chunk(label_num, 0): chunk size = ceil(N / label_num), last chunk
    # may be smaller.
    chunk = -(-n // label_num)
    sizes = []
    start = 0
    while start < n:
        sizes.append(min(chunk, n - start))
        start += sizes[-1]
    g = len(sizes)
    c_pad = chunk

    # Pad rows so every group has c_pad rows; padded rows are zero in BOTH
    # inputs, so their diff contributes nothing to the per-group sum.
    pad_rows = g * c_pad - n
    if pad_rows:
        feat1 = jnp.pad(feat1, ((0, pad_rows), (0, 0)))
        feat2 = jnp.pad(feat2, ((0, pad_rows), (0, 0)))
    f1 = feat1.reshape(g, c_pad, d)
    f2 = feat2.reshape(g, c_pad, d)

    inv_size = jnp.asarray(1.0 / np.asarray(sizes, dtype=np.float32))

    td = _pick_d_tile(d, c_pad)
    dt = d // td

    tile_bytes = c_pad * td * 4
    vmem_limit = int(min(64 << 20, max(16 << 20, 4 * tile_bytes + (2 << 20))))

    kernel = partial(_hetero_loss_kernel, margin=float(margin))

    out = pl.pallas_call(
        kernel,
        out_shape=jax.ShapeDtypeStruct((1, 1), jnp.float32),
        grid=(g, dt),
        in_specs=[
            # Per-group 1/size scalars, whole array resident in SMEM.
            pl.BlockSpec(memory_space=pltpu.MemorySpace.SMEM),
            # One group block per step, D tiled; leading group dim squeezed.
            pl.BlockSpec((None, c_pad, td), lambda gi, dj: (gi, 0, dj)),
            pl.BlockSpec((None, c_pad, td), lambda gi, dj: (gi, 0, dj)),
        ],
        # Scalar loss accumulated across the whole grid -> resident SMEM block.
        out_specs=pl.BlockSpec(memory_space=pltpu.MemorySpace.SMEM),
        scratch_shapes=[pltpu.SMEM((1,), jnp.float32)],
        compiler_params=pltpu.CompilerParams(
            # Both axes reduce into the single scalar output -> "arbitrary".
            dimension_semantics=("arbitrary", "arbitrary"),
            vmem_limit_bytes=vmem_limit,
        ),
    )(inv_size, f1, f2)
    return out[0, 0]


def _reference_jax(feat1, feat2, label1, margin=0.1):
    """Pure-JAX reference mirroring the PyTorch forward (l2 / MSE-sum path)."""
    feat1 = jnp.asarray(feat1, jnp.float32)
    feat2 = jnp.asarray(feat2, jnp.float32)
    n = feat1.shape[0]
    label_num = int(np.unique(np.asarray(label1)).shape[0])
    chunk = -(-n // label_num)
    dist = 0.0
    start = 0
    while start < n:
        size = min(chunk, n - start)
        c1 = jnp.mean(feat1[start:start + size], axis=0)
        c2 = jnp.mean(feat2[start:start + size], axis=0)
        dist = dist + jnp.maximum(jnp.sum((c1 - c2) ** 2) - margin, 0.0)
        start += size
    return dist


if __name__ == "__main__":
    key = jax.random.PRNGKey(0)

    # Case 1: equal-size chunks, small D (< 128 lanes, full-D block).
    k1, k2 = jax.random.split(key)
    N1, D1 = 8, 32
    f1a = jax.random.normal(k1, (N1, D1), dtype=jnp.float32)
    f2a = jax.random.normal(k2, (N1, D1), dtype=jnp.float32)
    lab1a = np.array([0, 0, 1, 1, 2, 2, 3, 3], dtype=np.int32)

    loss_a = jax.block_until_ready(
        hetero_loss_pallas(f1a, f2a, lab1a, lab1a, margin=0.1))
    ref_a = _reference_jax(f1a, f2a, lab1a, margin=0.1)
    np.testing.assert_allclose(np.asarray(loss_a), np.asarray(ref_a),
                               rtol=1e-5, atol=1e-5)

    # Case 2: uneven last chunk (zero-pad path) + lane-aligned D = 256.
    k3, k4 = jax.random.split(k1)
    N2, D2 = 10, 256
    f1b = jax.random.normal(k3, (N2, D2), dtype=jnp.float32)
    f2b = jax.random.normal(k4, (N2, D2), dtype=jnp.float32)
    lab1b = np.array([0, 0, 0, 1, 1, 1, 2, 2, 2, 3], dtype=np.int32)

    loss_b = jax.block_until_ready(
        hetero_loss_pallas(f1b, f2b, lab1b, lab1b, margin=0.1))
    ref_b = _reference_jax(f1b, f2b, lab1b, margin=0.1)
    np.testing.assert_allclose(np.asarray(loss_b), np.asarray(ref_b),
                               rtol=1e-5, atol=1e-5)

    print("KERNEL_OK")
</pallas_src>

<mosaic_0001>
module attributes {stable_mosaic.version = 11 : i64} {
  func.func @_hetero_loss_kernel(%arg0: i32, %arg1: i32, %arg2: memref<4xf32, #tpu.memory_space<smem>>, %arg3: memref<1x2x32xf32, #tpu.memory_space<vmem>>, %arg4: memref<1x2x32xf32, #tpu.memory_space<vmem>>, %arg5: memref<1x1xf32, #tpu.memory_space<smem>>, %arg6: memref<1xf32, #tpu.memory_space<smem>>) attributes {dimension_semantics = [#tpu.dimension_semantics<arbitrary>, #tpu.dimension_semantics<arbitrary>], iteration_bounds = array<i64: 4, 1>, scalar_prefetch = 0 : i64, scratch_operands = 1 : i64, tpu.core_type = #tpu.core_type<tc>, window_params = [{transform_indices = @transform_0, window_bounds = array<i64: 4>}, {transform_indices = @transform_1, window_bounds = array<i64: 1, 2, 32>}, {transform_indices = @transform_2, window_bounds = array<i64: 1, 2, 32>}, {transform_indices = @transform_3, window_bounds = array<i64: 1, 1>}]} {
    %c0_i32 = arith.constant 0 : i32
    %0 = arith.cmpi eq, %arg0, %c0_i32 : i32
    %c0_i32_0 = arith.constant 0 : i32
    %1 = arith.cmpi eq, %arg1, %c0_i32_0 : i32
    %2 = arith.andi %0, %1 : i1
    %3 = arith.extui %2 : i1 to i32
    %c0_i32_1 = arith.constant 0 : i32
    %4 = arith.cmpi ne, %3, %c0_i32_1 : i32
    scf.if %4 {
      %cst_14 = arith.constant 0.000000e+00 : f32
      %c0_15 = arith.constant 0 : index
      %c0_16 = arith.constant 0 : index
      %30 = memref.load %arg5[%c0_15, %c0_16] : memref<1x1xf32, #tpu.memory_space<smem>>
      memref.store %cst_14, %arg5[%c0_15, %c0_16] : memref<1x1xf32, #tpu.memory_space<smem>>
    } else {
    }
    %c0_i32_2 = arith.constant 0 : i32
    %5 = arith.cmpi eq, %arg1, %c0_i32_2 : i32
    %6 = arith.extui %5 : i1 to i32
    %c0_i32_3 = arith.constant 0 : i32
    %7 = arith.cmpi ne, %6, %c0_i32_3 : i32
    scf.if %7 {
      %cst_14 = arith.constant 0.000000e+00 : f32
      %c0_15 = arith.constant 0 : index
      %30 = memref.load %arg6[%c0_15] : memref<1xf32, #tpu.memory_space<smem>>
      memref.store %cst_14, %arg6[%c0_15] : memref<1xf32, #tpu.memory_space<smem>>
    } else {
    }
    %c0 = arith.constant 0 : index
    %c0_4 = arith.constant 0 : index
    %c0_5 = arith.constant 0 : index
    %8 = vector.load %arg3[%c0, %c0_4, %c0_5] : memref<1x2x32xf32, #tpu.memory_space<vmem>>, vector<1x2x32xf32>
    %9 = vector.shape_cast %8 : vector<1x2x32xf32> to vector<2x32xf32>
    %c0_6 = arith.constant 0 : index
    %c0_7 = arith.constant 0 : index
    %c0_8 = arith.constant 0 : index
    %10 = vector.load %arg4[%c0_6, %c0_7, %c0_8] : memref<1x2x32xf32, #tpu.memory_space<vmem>>, vector<1x2x32xf32>
    %11 = vector.shape_cast %10 : vector<1x2x32xf32> to vector<2x32xf32>
    %12 = arith.subf %9, %11 : vector<2x32xf32>
    %cst = arith.constant dense<0.000000e+00> : vector<32xf32>
    %13 = vector.multi_reduction <add>, %12, %cst [0] : vector<2x32xf32> to vector<32xf32>
    %14 = vector.shape_cast %13 : vector<32xf32> to vector<1x32xf32>
    %15 = arith.index_cast %arg0 : i32 to index
    %16 = memref.load %arg2[%15] : memref<4xf32, #tpu.memory_space<smem>>
    %17 = vector.broadcast %16 : f32 to vector<1x32xf32>
    %18 = arith.mulf %14, %17 : vector<1x32xf32>
    %c0_9 = arith.constant 0 : index
    %19 = memref.load %arg6[%c0_9] : memref<1xf32, #tpu.memory_space<smem>>
    %20 = arith.mulf %18, %18 : vector<1x32xf32>
    %21 = vector.shape_cast %20 : vector<1x32xf32> to vector<1x1x32xf32>
    %cst_10 = arith.constant dense<0.000000e+00> : vector<1xf32>
    %22 = vector.multi_reduction <add>, %21, %cst_10 [1, 2] : vector<1x1x32xf32> to vector<1xf32>
    %23 = vector.shape_cast %22 : vector<1xf32> to vector<1x1x1xf32>
    %24 = vector.extract %23[0, 0, 0] : f32 from vector<1x1x1xf32>
    %25 = arith.addf %19, %24 : f32
    %c0_11 = arith.constant 0 : index
    %26 = memref.load %arg6[%c0_11] : memref<1xf32, #tpu.memory_space<smem>>
    memref.store %25, %arg6[%c0_11] : memref<1xf32, #tpu.memory_space<smem>>
    %c0_i32_12 = arith.constant 0 : i32
    %27 = arith.cmpi eq, %arg1, %c0_i32_12 : i32
    %28 = arith.extui %27 : i1 to i32
    %c0_i32_13 = arith.constant 0 : i32
    %29 = arith.cmpi ne, %28, %c0_i32_13 : i32
    scf.if %29 {
      %c0_14 = arith.constant 0 : index
      %c0_15 = arith.constant 0 : index
      %30 = memref.load %arg5[%c0_14, %c0_15] : memref<1x1xf32, #tpu.memory_space<smem>>
      %c0_16 = arith.constant 0 : index
      %31 = memref.load %arg6[%c0_16] : memref<1xf32, #tpu.memory_space<smem>>
      %cst_17 = arith.constant 1.000000e-01 : f32
      %32 = arith.subf %31, %cst_17 : f32
      %cst_18 = arith.constant 0.000000e+00 : f32
      %33 = arith.maximumf %32, %cst_18 : f32
      %34 = arith.addf %30, %33 : f32
      %c0_19 = arith.constant 0 : index
      %c0_20 = arith.constant 0 : index
      %35 = memref.load %arg5[%c0_19, %c0_20] : memref<1x1xf32, #tpu.memory_space<smem>>
      memref.store %34, %arg5[%c0_19, %c0_20] : memref<1x1xf32, #tpu.memory_space<smem>>
    } else {
    }
    return
  }
  func.func @transform_0(%arg0: i32, %arg1: i32) -> i32 {
    %c0_i32 = arith.constant 0 : i32
    %c0_i32_0 = arith.constant 0 : i32
    return %c0_i32 : i32
  }
  func.func @transform_1(%arg0: i32, %arg1: i32) -> (i32, i32, i32) {
    %c0_i32 = arith.constant 0 : i32
    %c0_i32_0 = arith.constant 0 : i32
    return %arg0, %c0_i32, %arg1 : i32, i32, i32
  }
  func.func @transform_2(%arg0: i32, %arg1: i32) -> (i32, i32, i32) {
    %c0_i32 = arith.constant 0 : i32
    %c0_i32_0 = arith.constant 0 : i32
    return %arg0, %c0_i32, %arg1 : i32, i32, i32
  }
  func.func @transform_3(%arg0: i32, %arg1: i32) -> (i32, i32) {
    %c0_i32 = arith.constant 0 : i32
    %c0_i32_0 = arith.constant 0 : i32
    %c0_i32_1 = arith.constant 0 : i32
    return %c0_i32, %c0_i32_0 : i32, i32
  }
}

</mosaic_0001>

<bundles_post_ra>
// kernel: tpu_custom_call.1
= control target key start
LH: loop header
LB: loop body
LE: loop exit
PB: predicated region body
PF: predicated region fallthrough
CT: control target
= control target key end

     0   :  { %8 = vsyncpa [#allocation5], 0  ;;  %s799_s0 = inlined_call_operand.hbm [shape: f32[4], index: 0, kind: input, shape index: {}]   ;;  %s800_s1 = inlined_call_operand.hbm [shape: f32[4,2,32], index: 1, kind: input, shape index: {}]   ;;  %s801_s2 = inlined_call_operand.hbm [shape: f32[4,2,32], index: 2, kind: input, shape index: {}]   ;;  %s802_s3 = inlined_call_operand.hbm [shape: f32[1,1], index: 3, kind: output, shape index: {}]  }
   0x1   :  { %9 = vsyncpa [#allocation4], 0 }
   0x2   :  { %11 = vsyncpa [#allocation4 + $0x1], 0 }
   0x3   :  { %12 = vsyncpa [#allocation9], 0 }
   0x4   :  { %14 = vsyncpa [#allocation9 + $0x1], 0 }
   0x5   :  { %15 = vsyncpa [#allocation6], 0  ;;  %s681_s12 = smov 0   ;;  %s683_s13 = smov 0  }
   0x6   :  { %s685_s14 = smov 0   ;;  %s687_s15 = smov 0  }
   0x7   :  { %s689_s16 = smov 0   ;;  %s691_s17 = smov 0  }
   0x8 LB: > { %s404_s18 = sadd.s32 4294967295, %s656_s17   ;;  %p76_p0 = scmp.ne.s32.totalorder %s640_s13, %s636_s12  ;;  %s656_s17 = sphi %s691_s17, %s21_s17   ;;  %s652_s16 = sphi %s689_s16, %s810_s16   ;;  %s648_s15 = sphi %s687_s15, %s809_s15   ;;  %s644_s14 = sphi %s685_s14, %s808_s14   ;;  %s640_s13 = sphi %s683_s13, %s807_s13   ;;  %s636_s12 = sphi %s681_s12, %s806_s12  }
   0x9   : > { %p713_p1 = scmp.eq.s32.totalorder %s404_s18, 0  ;;  %p405_p2 = scmp.ge.s32.totalorder %s656_s17, 1 }
   0xa   : > { %p136_p3 = scmp.lt.s32.totalorder %s656_s17, 5  ;;  %s148_s23 = sshll.u32 %s799_s0, 4  ;;  %s149_s23 = int_to_ptr.hbm [resolvable:$true] %s148_s23 }
   0xb   : > { %p721_p4 = por %p713_p1, %p76_p0  ;;  %s33_s25 = sadd.s32 1, %s652_s16 }
   0xc   : > { %p728_p5 = pnand %p405_p2, %p136_p3  ;;  %s63_s26 = sadd.s32 1, %s644_s14 }
   0xd   : > { %p35_p8 = scmp.ge.s32.totalorder %s33_s25, 4  ;;  %s658_s27 = smov [#allocation3]  }
   0xe   : > { %p438_p6 = pneg %p728_p5  ;;  %p70_p9 = scmp.ne.s32.totalorder %s644_s14, %s640_s13 }
   0xf   : > { %s812_s25 = smov (%p35_p8, %s33_s25), 0  ;;  %p71_p10 = scmp.eq.s32.totalorder %s656_s17, 0 }
  0x10   : > { %p439_p7 = pnand %p438_p6, %p713_p1  ;;  %s58_s28 = ssub.s32 %s652_s16, %s812_s25 }
  0x11   : > { %p450_p11 = scmp.lt.s32.totalorder %s656_s17, 4  ;;  %p61_p12 = scmp.eq.s32.totalorder %s58_s28, 0 }
  0x12   : > { %441 = dma.hbm_to_smem (!%p439_p7), %s149_s23, 16, %s658_s27, [#allocation5]  }
  0x13   : > { %p72_p13 = por %p71_p10, %p70_p9  ;;  %s159_s29 = sand.u32 1, %s644_s14  }
  0x14   : > { %s409_s30 = sshll.u32 %s652_s16, 1  ;;  %s408_s5 = sshll.u32 %s159_s29, 1 }
  0x15   : > { %s749_s4 = scalar_select %p61_p12, %s644_s14, %s63_s26  }
  0x16   : > { %s168_s8 = scalar_lea.hbm %s800_s1, %s409_s30  ;;  %s163_s10 = scalar_lea.vmem [#allocation7], %s408_s5 }
  0x17   : > { %s170_s9 = sshll.u32 %s168_s8, 4  ;;  %s172_s11 = sshll.u32 %s163_s10, 4  ;;  %s171_s9 = int_to_ptr.hbm [resolvable:$true] %s170_s9  ;;  %s173_s11 = int_to_ptr.vmem [resolvable:$true] %s172_s11 }
  0x18   : > { %p443_p0 = pnand %p450_p11, %p72_p13  ;;  %s188_s22 = scalar_lea.hbm %s801_s2, %s409_s30 }
  0x19   : > { %s190_s23 = sshll.u32 %s188_s22, 4  ;;  %s160_s27 = scalar_lea.sflag [#allocation4], %s159_s29  ;;  %s191_s23 = int_to_ptr.hbm [resolvable:$true] %s190_s23 }
  0x1a   : > { %445 = dma.hbm_to_vmem [thread:$0]  (!%p443_p0), %s171_s9, 32, %s173_s11, %s160_s27  }
  0x1b   : > { %s183_s26 = scalar_lea.vmem [#allocation8], %s408_s5  ;;  %s180_s6 = scalar_lea.sflag [#allocation9], %s159_s29 }
  0x1c   : > { %s192_s28 = sshll.u32 %s183_s26, 4  ;;  %201 = sbr.rel (%p728_p5) target bundleno = 251 (0xfb), region = 32  ;;  %s193_s28 = int_to_ptr.vmem [resolvable:$true] %s192_s28 }
  0x1d   : > { %448 = dma.hbm_to_vmem [thread:$0]  (!%p443_p0), %s191_s23, 32, %s193_s28, %s180_s6  }
  0x21   : > { %619 = dma.done.wait (%p713_p1), [#allocation5], 16  }
  0x22   : > { %621 = vsyncadd (%p713_p1), [#allocation5], 4294967280  ;;  %s208_s30 = sand.u32 1, %s640_s13  }
  0x23   : > { %s414_s7 = sshll.u32 %s208_s30, 1  ;;  %s209_s8 = scalar_lea.sflag [#allocation4], %s208_s30 }
  0x24   : > { %s212_s9 = scalar_lea.vmem [#allocation7], %s414_s7 }
  0x25   : > { %623 = dma.done.wait (%p721_p4), %s209_s8, 32  }
  0x26   : > { %625 = vsyncadd (%p721_p4), %s209_s8, 4294967264  ;;  %s219_s24 = scalar_lea.sflag [#allocation9], %s208_s30  ;;  %s222_s29 = scalar_lea.vmem [#allocation8], %s414_s7 }
  0x27   : > { %627 = dma.done.wait (%p721_p4), %s219_s24, 32  }
  0x28   : > { %629 = vsyncadd (%p721_p4), %s219_s24, 4294967264 }
  0x29   : > { %228 = sfence }
  0x2a   : > { %v260_v0 = vld [vmem:[%s212_s9] sm:$0x3]  ;;  %v261_v1 = vld [vmem:[%s222_s29] sm:$0x3]  ;;  %vm263_vm0 = vcmask 254976   ;;  %s271_s19 = sld [smem:[#allocation3 + %s648_s15]] }
  0x2b   : > { %v262_v2 = vsub.f32 %v260_v0, %v261_v1  ;;  %vm276_vm1 = vcmask 253952   ;;  %p247_p1 = scmp.eq.s32.totalorder %s648_s15, 0  ;;  %s659_s20 = smov 0.0  }
  0x2c   : > { %s306_s21 = sshll.u32 %s802_s3, 4  ;;  %p452_p2 = scmp.eq.s32.totalorder %s404_s18, 3  ;;  %s307_s21 = int_to_ptr.hbm [resolvable:$true] %s306_s21 }
  0x2d   : > { %v264_v3 = vsel %vm263_vm0, %v262_v2, 0.0  ;;  %433 = sst [smem:[#allocation10]] (%p247_p1), %s659_s20  ;;  %s660_s27 = smov [#allocation10]  }
  0x2e   : > { %v265_v4 = vrot.slane %v264_v3, 4  ;;  %s293_s5 = sld [smem:[#allocation10]] }
  0x30   : > { %v266_v5 = vadd.f32 %v265_v4, %v264_v3  ;;  %v272_v9 = vstv %s271_s19 }
  0x32   : > { %v267_v6 = vrot.slane %v266_v5, 2 }
  0x34   : > { %v268_v7 = vadd.f32 %v267_v6, %v266_v5 }
  0x36   : > { %v269_v8 = vrot.slane %v268_v7, 1 }
  0x38   : > { %v270_v10 = vadd.f32 %v269_v8, %v268_v7 }
  0x3a   : > { %v273_v11 = vmul.f32 %v272_v9, %v270_v10 }
  0x3c   : > { %v275_v12 = vmul.f32 %v273_v11, %v273_v11 }
  0x3e   : > { %v277_v13 = vsel %vm276_vm1, %v275_v12, 0.0 }
  0x3f   : > { %278 = vadd.xlane.f32.xlu0 %v277_v13 }
  0xb2   : > { %v279_v14 = vpop.xlane.xlu0 %278 }
  0xb3   : > { %v280_v15 = vrot.slane %v279_v14, 4 }
  0xb5   : > { %v281_v16 = vadd.f32 %v280_v15, %v279_v14 }
  0xb7   : > { %v282_v17 = vrot.slane %v281_v16, 2 }
  0xb9   : > { %v283_v18 = vadd.f32 %v282_v17, %v281_v16 }
  0xbb   : > { %v284_v19 = vrot.slane %v283_v18, 1 }
  0xbd   : > { %v285_v20 = vadd.f32 %v284_v19, %v283_v18 }
  0xbf   : > { %423 = vpush %v285_v20 }
  0xf0   : > { %s424_s10 = spop %423 }
  0xf1   : > { %s417_s22 = sadd.f32 -0.1, %s424_s10 }
  0xf3   : > { %s296_s15 = smax.f32 %s659_s20, %s417_s22 }
  0xf4   : > { %s297_s23 = sadd.f32 %s296_s15, %s293_s5 }
  0xf6   : > { %299 = sst [smem:[#allocation10]] %s297_s23 }
  0xf7   : > { %435 = dma.smem_to_hbm (%p452_p2), %s660_s27, 16, %s307_s21, [#allocation6]  }
  0xf8   : > { %631 = dma.done.wait (%p452_p2), [#allocation6], 16  }
  0xf9   : > { %633 = vsyncadd (%p452_p2), [#allocation6], 4294967280 }
  0xfa   : > { %315 = sfence }
  0xfb PF: > { %s21_s17 = sadd.s32 1, %s656_s17   ;;  %s806_s12 = smov %s640_s13 }
  0xfc   : > { %p18_p3 = scmp.ge.s32.totalorder %s21_s17, 6   ;;  %s807_s13 = smov %s644_s14 }
  0xfd   : > { %s808_s14 = smov %s749_s4  ;;  %s809_s15 = smov %s652_s16 }
  0xfe   : > { %s810_s16 = smov %s812_s25  ;;  %20 = sbr.rel (!%p18_p3) target bundleno = 8 (0x8), region = 103 }
 0x103   :  { %321 = vsyncpa [#allocation4], 1 }
 0x104   :  { %323 = vsyncpa [#allocation4 + $0x1], 1 }
 0x105   :  { %324 = vsyncpa [#allocation9], 1 }
 0x106   :  { %326 = vsyncpa [#allocation9 + $0x1], 1 }
 0x107   :  { %327 = vsyncpa [#allocation5], 1 }
 0x108   :  { %329 = vsyncpa [#allocation5 + $0x1], 1 }
 0x109   :  { %330 = vsyncpa [#allocation6], 1 }
 0x10a   :  { %332 = vsyncpa [#allocation6 + $0x1], 1 }

</bundles_post_ra>
